<compile_context>
chip_gen: v5e
topology: v5e:2x2
jax: 0.10.0
libtpu: 0.0.40
codegen_flags: <defaults>
</compile_context>

<pallas_src>
import functools
import math

import jax
import jax.numpy as jnp
from jax.experimental import pallas as pl
from jax.experimental.pallas import tpu as pltpu

_LANE = 128
# Generation-safe scoped-VMEM cap: above default scoped limits, well under v7x's 64 MiB physical.
_VMEM_LIMIT = 40 * 1024 * 1024


def _round_up(x, m):
    return ((x + m - 1) // m) * m


def _pad2d(x, rows, cols):
    return jnp.pad(x, ((0, rows - x.shape[0]), (0, cols - x.shape[1])))


def _pick_tile(dim, target):
    """Largest multiple of 128 that divides `dim` (a multiple of 128) and is <= target."""
    t = max(_LANE, (min(dim, target) // _LANE) * _LANE)
    while dim % t:
        t -= _LANE
    return t


# ----------------------------------------------------------------------------
# Elementwise scalar MLP  Linear(1,dim) -> ReLU -> Linear(dim,1)
# (params are SMEM scalar-prefetch refs; dim is a Python int -> fully unrolled;
#  computes in v.dtype so the NSF kernel can run the f_edge MLP in bf16)
# ----------------------------------------------------------------------------
def _scalar_mlp(v, w1_ref, b1_ref, w2_ref, b2_ref, dim):
    dt = v.dtype
    acc = jnp.zeros_like(v)
    for k in range(dim):
        t = jnp.maximum(v * w1_ref[k].astype(dt) + b1_ref[k].astype(dt), 0)
        acc = acc + t * w2_ref[k].astype(dt)
    return acc + b2_ref[0].astype(dt)


# ----------------------------------------------------------------------------
# Kernel 1: fused gcn_norm + bf16 cast    out[i,j] = dinv[i]*dinv[j]*( i==j ? 1 : [A[i,j]!=0] )
# ----------------------------------------------------------------------------
def _gcn_norm_kernel(a_ref, dr_ref, dc_ref, o_ref, *, tr, tc):
    i = pl.program_id(0)
    j = pl.program_id(1)
    rows = i * tr + jax.lax.broadcasted_iota(jnp.int32, (tr, tc), 0)
    cols = j * tc + jax.lax.broadcasted_iota(jnp.int32, (tr, tc), 1)
    a = a_ref[...]
    base = jnp.where(rows == cols, 1.0, jnp.where(a != 0.0, 1.0, 0.0))
    o_ref[...] = (base * dr_ref[...] * dc_ref[...]).astype(o_ref.dtype)


def gcn_norm_cast(A_pad, dinv, *, tr_target=512, tc_target=512):
    n = A_pad.shape[0]
    tr = _pick_tile(n, tr_target)
    tc = _pick_tile(n, tc_target)
    dr = dinv.reshape(n, 1)
    dc = dinv.reshape(1, n)
    return pl.pallas_call(
        functools.partial(_gcn_norm_kernel, tr=tr, tc=tc),
        out_shape=jax.ShapeDtypeStruct((n, n), jnp.bfloat16),
        grid_spec=pltpu.PrefetchScalarGridSpec(
            num_scalar_prefetch=0,
            grid=(n // tr, n // tc),
            in_specs=[
                pl.BlockSpec((tr, tc), lambda i, j: (i, j)),
                pl.BlockSpec((tr, 1), lambda i, j: (i, 0)),
                pl.BlockSpec((1, tc), lambda i, j: (0, j)),
            ],
            out_specs=pl.BlockSpec((tr, tc), lambda i, j: (i, j)),
        ),
        compiler_params=pltpu.CompilerParams(
            dimension_semantics=("parallel", "parallel"),
            vmem_limit_bytes=_VMEM_LIMIT,
        ),
    )(A_pad, dr, dc)


# ----------------------------------------------------------------------------
# Kernel 2: tiled matmul + bias + optional ReLU   (out = A @ B + bias)
# ----------------------------------------------------------------------------
def _matmul_kernel(a_ref, b_ref, bias_ref, o_ref, acc_ref, *, apply_relu):
    k = pl.program_id(2)

    @pl.when(k == 0)
    def _():
        acc_ref[...] = jnp.zeros_like(acc_ref)

    acc_ref[...] += jnp.dot(a_ref[...], b_ref[...], preferred_element_type=jnp.float32)

    @pl.when(k == pl.num_programs(2) - 1)
    def _():
        out = acc_ref[...] + bias_ref[...]
        if apply_relu:
            out = jnp.maximum(out, 0.0)
        o_ref[...] = out.astype(o_ref.dtype)


def matmul_bias_act(a, b, bias, *, apply_relu, out_dtype,
                    tm_target=512, tn_target=256, tk_target=512):
    m, k_dim = a.shape
    k_dim2, n = b.shape
    assert k_dim == k_dim2
    tm = _pick_tile(m, tm_target)
    tn = _pick_tile(n, tn_target)
    tk = _pick_tile(k_dim, tk_target)
    grid = (m // tm, n // tn, k_dim // tk)
    return pl.pallas_call(
        functools.partial(_matmul_kernel, apply_relu=apply_relu),
        out_shape=jax.ShapeDtypeStruct((m, n), out_dtype),
        grid_spec=pltpu.PrefetchScalarGridSpec(
            num_scalar_prefetch=0,
            grid=grid,
            in_specs=[
                pl.BlockSpec((tm, tk), lambda i, j, k: (i, k)),
                pl.BlockSpec((tk, tn), lambda i, j, k: (k, j)),
                pl.BlockSpec((1, tn), lambda i, j, k: (0, j)),
            ],
            out_specs=pl.BlockSpec((tm, tn), lambda i, j, k: (i, j)),
            scratch_shapes=[pltpu.VMEM((tm, tn), jnp.float32)],
        ),
        compiler_params=pltpu.CompilerParams(
            dimension_semantics=("parallel", "parallel", "arbitrary"),
            vmem_limit_bytes=_VMEM_LIMIT,
        ),
    )(a, b, bias)


def gcn_layer(adj_bf16, x_bf16, w_pad, b_pad, *, apply_relu, out_dtype):
    """out = adj_norm @ (X @ W) + b (+ReLU). bf16 MXU operands, f32 accumulation."""
    zero_bias = jnp.zeros((1, w_pad.shape[1]), jnp.float32)
    xw = matmul_bias_act(x_bf16, w_pad.astype(jnp.bfloat16), zero_bias,
                         apply_relu=False, out_dtype=jnp.bfloat16)
    # Large tm on the adjacency stream: fewer re-streams of XW, fewer grid steps (review item).
    return matmul_bias_act(adj_bf16, xw, b_pad, apply_relu=apply_relu, out_dtype=out_dtype,
                           tm_target=2048, tn_target=256, tk_target=512)


# ----------------------------------------------------------------------------
# Kernel 3: node structural weights  wn2[j] = f_node( sum_i f_edge(A[i,j]) * [A[i,j]!=0] )^2
# Grid = (column tiles [parallel], row tiles [reduction, arbitrary, last]).
# ----------------------------------------------------------------------------
def _nsf_kernel(few1, feb1, few2, feb2, fnw1, fnb1, fnw2, fnb2,
                a_ref, wn2_ref, acc_ref, *, f_edge_dim, f_node_dim, compute_dtype):
    i = pl.program_id(1)   # row-tile (reduction) axis

    @pl.when(i == 0)
    def _():
        acc_ref[...] = jnp.zeros_like(acc_ref)

    a = a_ref[...]                              # (tr, tc) f32
    v = a.astype(compute_dtype)                 # bf16 on v6e/v7x (VALU-bound kernel), f32 on v5e
    fe = _scalar_mlp(v, few1, feb1, few2, feb2, f_edge_dim)
    masked = jnp.where(a != 0.0, fe, jnp.zeros_like(fe))
    acc_ref[...] += jnp.sum(masked.astype(jnp.float32), axis=0, keepdims=True)

    @pl.when(i == pl.num_programs(1) - 1)
    def _():
        w = _scalar_mlp(acc_ref[...], fnw1, fnb1, fnw2, fnb2, f_node_dim)   # f32
        wn2_ref[...] = w * w


def node_struct_weights(A_pad, f_edge_p, f_node_p, *, f_edge_dim, f_node_dim,
                        tr_target=512, tc_target=1024, compute_dtype=jnp.bfloat16):
    n = A_pad.shape[0]
    tr = _pick_tile(n, tr_target)
    tc = _pick_tile(n, tc_target)
    grid = (n // tc, n // tr)   # reduction (row) axis last
    args = tuple(f_edge_p) + tuple(f_node_p) + (A_pad,)
    return pl.pallas_call(
        functools.partial(_nsf_kernel, f_edge_dim=f_edge_dim, f_node_dim=f_node_dim,
                          compute_dtype=compute_dtype),
        out_shape=jax.ShapeDtypeStruct((1, n), jnp.float32),
        grid_spec=pltpu.PrefetchScalarGridSpec(
            num_scalar_prefetch=8,
            grid=grid,
            in_specs=[pl.BlockSpec((tr, tc), lambda j, i, *_: (i, j))],
            out_specs=pl.BlockSpec((1, tc), lambda j, i, *_: (0, j)),
            scratch_shapes=[pltpu.VMEM((1, tc), jnp.float32)],
        ),
        compiler_params=pltpu.CompilerParams(
            dimension_semantics=("parallel", "arbitrary"),
            vmem_limit_bytes=_VMEM_LIMIT,
        ),
    )(*args)


# ----------------------------------------------------------------------------
# Kernel 4: per-edge structural score + per-edge feature products.
# Grid = (B/TB,), batch-block axis "parallel".  For each block of TB edges:
#   * 2*TB full A rows and 2*TB GCN-output rows are gathered HBM->VMEM with manual DMAs
#     (ids from the scalar-prefetch ref; one dense row per DMA),
#   * wn2 stays fully VMEM-resident (single (1, Npad) block),
#   * struct[b] = g_phi( sum_j A[s,j]*A[d,j]*wn2[j] ), sigmoid on EUP,
#   * feat[b,:] = x[s,:]*x[d,:]  (summed over the real batch in JAX afterwards).
# Outputs are per-block (blocked out_specs) -> no shared accumulators, no O(B^2) scatter.
# ----------------------------------------------------------------------------
def _edge_kernel(ids_ref, gpw1, gpb1, gpw2, gpb2,
                 a_hbm, h_hbm, wn2_ref,
                 raw_ref, sig_ref, feat_ref,
                 asrc, adst, hs, hd, sems, *, g_phi_dim, tb):
    bb = pl.program_id(0)

    copies = []
    for t in range(tb):
        sid = ids_ref[0, bb * tb + t]
        did = ids_ref[1, bb * tb + t]
        pairs = (
            (a_hbm.at[pl.ds(sid, 1), :], asrc.at[pl.ds(t, 1), :]),
            (a_hbm.at[pl.ds(did, 1), :], adst.at[pl.ds(t, 1), :]),
            (h_hbm.at[pl.ds(sid, 1), :], hs.at[pl.ds(t, 1), :]),
            (h_hbm.at[pl.ds(did, 1), :], hd.at[pl.ds(t, 1), :]),
        )
        for q, (src, dst) in enumerate(pairs):
            cp = pltpu.make_async_copy(src, dst, sems.at[q, t])
            cp.start()
            copies.append(cp)
    for cp in copies:
        cp.wait()

    # Structural branch: one lane reduction per edge row.
    prod = asrc[...] * adst[...] * wn2_ref[...]           # (tb, Npad) f32
    ssum = jnp.sum(prod, axis=1, keepdims=True)           # (tb, 1)
    raw = _scalar_mlp(ssum, gpw1, gpb1, gpw2, gpb2, g_phi_dim)
    raw_ref[...] = raw
    sig_ref[...] = jax.nn.sigmoid(raw)                    # EUP exp/recip

    # Feature branch: per-edge elementwise products (batch-sum done in JAX on the real B).
    feat_ref[...] = hs[...] * hd[...]


def neognn_edge_scores(A_pad, wn2, h_pad, edge_ids, g_phi_p, *, g_phi_dim, tb=8):
    npad = A_pad.shape[0]
    fpad = h_pad.shape[1]
    bp = edge_ids.shape[1]
    assert bp % tb == 0
    nb = bp // tb
    gpw1, gpb1, gpw2, gpb2 = g_phi_p
    return pl.pallas_call(
        functools.partial(_edge_kernel, g_phi_dim=g_phi_dim, tb=tb),
        out_shape=(jax.ShapeDtypeStruct((bp, 1), jnp.float32),      # g_phi raw
                   jax.ShapeDtypeStruct((bp, 1), jnp.float32),      # sigmoid
                   jax.ShapeDtypeStruct((bp, fpad), jnp.float32)),  # per-edge x[s]*x[d]
        grid_spec=pltpu.PrefetchScalarGridSpec(
            num_scalar_prefetch=5,
            grid=(nb,),
            in_specs=[
                pl.BlockSpec(memory_space=pl.ANY),                     # A    (raw HBM, DMA gather)
                pl.BlockSpec(memory_space=pl.ANY),                     # h    (raw HBM, DMA gather)
                pl.BlockSpec((1, npad), lambda bb, *_: (0, 0)),        # wn2  (VMEM-resident)
            ],
            out_specs=(
                pl.BlockSpec((tb, 1), lambda bb, *_: (bb, 0)),
                pl.BlockSpec((tb, 1), lambda bb, *_: (bb, 0)),
                pl.BlockSpec((tb, fpad), lambda bb, *_: (bb, 0)),
            ),
            scratch_shapes=[
                pltpu.VMEM((tb, npad), jnp.float32),
                pltpu.VMEM((tb, npad), jnp.float32),
                pltpu.VMEM((tb, fpad), jnp.float32),
                pltpu.VMEM((tb, fpad), jnp.float32),
                pltpu.SemaphoreType.DMA((4, tb)),
            ],
        ),
        compiler_params=pltpu.CompilerParams(
            dimension_semantics=("parallel",),   # per-block outputs -> safe to split across TCs
            vmem_limit_bytes=_VMEM_LIMIT,
        ),
    )(edge_ids, gpw1, gpb1, gpw2, gpb2, A_pad, h_pad, wn2)


# ----------------------------------------------------------------------------
# Plain-JAX glue: parameter init + full forward
# ----------------------------------------------------------------------------
def glorot_uniform(key, shape):
    stdv = math.sqrt(6.0 / (shape[-2] + shape[-1]))
    return jax.random.uniform(key, shape, jnp.float32, -stdv, stdv)


def linear_init(key, fan_in, fan_out):
    bound = 1.0 / math.sqrt(fan_in)
    kw, kb = jax.random.split(key)
    w = jax.random.uniform(kw, (fan_out, fan_in), jnp.float32, -bound, bound)
    b = jax.random.uniform(kb, (fan_out,), jnp.float32, -bound, bound)
    return w, b


def init_neognn_params(key, in_channels, hidden_channels, out_channels, num_layers,
                       f_edge_dim, f_node_dim, g_phi_dim):
    keys = jax.random.split(key, num_layers + 6)
    convs = []
    dims = [in_channels] + [hidden_channels] * (num_layers - 1) + [out_channels]
    for i in range(num_layers):
        w = glorot_uniform(keys[i], (dims[i], dims[i + 1]))
        b = jnp.zeros((dims[i + 1],), jnp.float32)
        convs.append((w, b))

    def scalar_mlp_params(k, d):
        k1, k2 = jax.random.split(k)
        w1, b1 = linear_init(k1, 1, d)       # Linear(1, d):  w1 [d,1]
        w2, b2 = linear_init(k2, d, 1)       # Linear(d, 1):  w2 [1,d]
        return (w1[:, 0], b1, w2[0], b2)     # -> (d,), (d,), (d,), (1,)

    f_edge = scalar_mlp_params(keys[num_layers + 0], f_edge_dim)
    f_node = scalar_mlp_params(keys[num_layers + 1], f_node_dim)
    g_phi = scalar_mlp_params(keys[num_layers + 2], g_phi_dim)
    alpha = jnp.zeros((2,), jnp.float32)     # torch.FloatTensor([0, 0])

    return dict(convs=convs, f_edge=f_edge, f_node=f_node, g_phi=g_phi, alpha=alpha)


def neognn_forward(params, edge, x, A, f_edge_dim, f_node_dim, g_phi_dim, *,
                   nsf_compute_dtype=jnp.bfloat16, edge_block=8):
    """Returns (out, out_struct, out_feat, out_struct_raw) matching NeoGNN.forward
    (predictor=None, eval mode)."""
    n = A.shape[0]
    batch = edge.shape[1]
    out_channels = params["convs"][-1][0].shape[1]

    npad = _round_up(n, _LANE)
    A_pad = _pad2d(A, npad, npad)          # padded nodes are isolated -> real rows unaffected

    # --- feature branch (GCN stack) -----------------------------------------
    # Degrees of A_hat = binarized(A) with diagonal forced to 1 (self loop): one fused XLA reduce.
    nz = (A_pad != 0.0)
    eye = jnp.eye(npad, dtype=bool)
    deg = jnp.sum(jnp.where(eye, 1.0, nz.astype(jnp.float32)), axis=1)
    dinv = jnp.where(deg > 0, jax.lax.rsqrt(deg), 0.0)
    # Single Pallas pass: binarize + self-loop + symmetric normalize + bf16 cast.
    adj_bf16 = gcn_norm_cast(A_pad, dinv)

    fin_pad = _round_up(x.shape[1], _LANE)
    h = _pad2d(x, npad, fin_pad).astype(jnp.bfloat16)

    n_layers = len(params["convs"])
    for li, (w, b) in enumerate(params["convs"]):
        fin, fout = w.shape
        w_pad = _pad2d(w, _round_up(fin, _LANE), _round_up(fout, _LANE))
        b_pad = jnp.pad(b, (0, _round_up(fout, _LANE) - fout)).reshape(1, -1)
        last = li == n_layers - 1
        h = gcn_layer(adj_bf16, h, w_pad, b_pad, apply_relu=not last,
                      out_dtype=jnp.float32 if last else jnp.bfloat16)
        # dropout skipped (eval mode)

    # --- structural branch ---------------------------------------------------
    wn2 = node_struct_weights(A_pad, params["f_edge"], params["f_node"],
                              f_edge_dim=f_edge_dim, f_node_dim=f_node_dim,
                              compute_dtype=nsf_compute_dtype)            # [1, Npad]

    bp = _round_up(batch, edge_block)
    edge_p = jnp.pad(edge.astype(jnp.int32), ((0, 0), (0, bp - batch)))   # pad with node 0
    raw, sig, featp = neognn_edge_scores(A_pad, wn2, h, edge_p, params["g_phi"],
                                         g_phi_dim=g_phi_dim, tb=edge_block)

    out_struct_raw = raw[:batch]                               # [B, 1]
    out_struct = sig[:batch]                                   # [B, 1]
    # torch: out_feat = sum over batch (dim=0) of x[src]*x[dst] -> shape [F]
    out_feat = jnp.sum(featp[:batch], axis=0)[:out_channels]

    alpha = jax.nn.softmax(params["alpha"])
    out = alpha[0] * out_struct + alpha[1] * out_feat[None, :] + 1e-15    # [B, F] broadcast
    return out, out_struct, out_feat, out_struct_raw


# ----------------------------------------------------------------------------
if __name__ == "__main__":
    key = jax.random.PRNGKey(0)
    k_adj, k_val, k_x, k_edge, k_params = jax.random.split(key, 5)

    # Small synthetic sizes (padded internally to 128 multiples)
    N = 64                # num_nodes
    B = 8                 # batch of query edges
    in_channels = 16
    hidden_channels = 32
    out_channels = 32
    num_layers = 3
    f_edge_dim = 8
    f_node_dim = 8
    g_phi_dim = 8

    # Symmetric weighted sparse-ish adjacency A (dense storage, zeros = no edge)
    m = (jax.random.uniform(k_adj, (N, N)) < 0.12).astype(jnp.float32)
    v = jax.random.uniform(k_val, (N, N), jnp.float32, 0.5, 1.5)
    A = jnp.triu(m * v, k=1)
    A = A + A.T

    # Node features and query edges
    x = jax.random.normal(k_x, (N, in_channels), jnp.float32)
    edge = jax.random.randint(k_edge, (2, B), 0, N, dtype=jnp.int32)

    params = init_neognn_params(
        k_params, in_channels, hidden_channels, out_channels, num_layers,
        f_edge_dim, f_node_dim, g_phi_dim,
    )

    out, out_struct, out_feat, out_raw = neognn_forward(
        params, edge, x, A, f_edge_dim, f_node_dim, g_phi_dim,
    )
    jax.block_until_ready((out, out_struct, out_feat, out_raw))

    assert out.shape == (B, out_channels)
    assert out_struct.shape == (B, 1)
    assert out_feat.shape == (out_channels,)
    assert out_raw.shape == (B, 1)
    assert bool(jnp.all(jnp.isfinite(out)))
    print("KERNEL_OK")
</pallas_src>

<mosaic_0001>
module attributes {stable_mosaic.version = 11 : i64} {
  func.func @_gcn_norm_kernel(%arg0: i32, %arg1: i32, %arg2: memref<128x128xf32, #tpu.memory_space<vmem>>, %arg3: memref<128x1xf32, #tpu.memory_space<vmem>>, %arg4: memref<1x128xf32, #tpu.memory_space<vmem>>, %arg5: memref<128x128xbf16, #tpu.memory_space<vmem>>) attributes {dimension_semantics = [#tpu.dimension_semantics<parallel>, #tpu.dimension_semantics<parallel>], iteration_bounds = array<i64: 1, 1>, scalar_prefetch = 0 : i64, scratch_operands = 0 : i64, tpu.core_type = #tpu.core_type<tc>, window_params = [{transform_indices = @transform_0, window_bounds = array<i64: 128, 128>}, {transform_indices = @transform_1, window_bounds = array<i64: 128, 1>}, {transform_indices = @transform_2, window_bounds = array<i64: 1, 128>}, {transform_indices = @transform_3, window_bounds = array<i64: 128, 128>}]} {
    %c128_i32 = arith.constant 128 : i32
    %0 = arith.muli %arg0, %c128_i32 : i32
    %1 = tpu.iota {dimensions = array<i32: 0>} : vector<128x128xi32>
    %2 = vector.broadcast %0 : i32 to vector<128x128xi32>
    %3 = arith.addi %2, %1 : vector<128x128xi32>
    %c128_i32_0 = arith.constant 128 : i32
    %4 = arith.muli %arg1, %c128_i32_0 : i32
    %5 = tpu.iota {dimensions = array<i32: 1>} : vector<128x128xi32>
    %6 = vector.broadcast %4 : i32 to vector<128x128xi32>
    %7 = arith.addi %6, %5 : vector<128x128xi32>
    %c0 = arith.constant 0 : index
    %c0_1 = arith.constant 0 : index
    %8 = vector.load %arg2[%c0, %c0_1] : memref<128x128xf32, #tpu.memory_space<vmem>>, vector<128x128xf32>
    %9 = arith.cmpi eq, %3, %7 : vector<128x128xi32>
    %cst = arith.constant 0.000000e+00 : f32
    %10 = vector.broadcast %cst : f32 to vector<128x128xf32>
    %11 = arith.cmpf one, %8, %10 : vector<128x128xf32>
    %cst_2 = arith.constant 1.000000e+00 : f32
    %cst_3 = arith.constant 0.000000e+00 : f32
    %12 = vector.broadcast %cst_2 : f32 to vector<128x128xf32>
    %13 = vector.broadcast %cst_3 : f32 to vector<128x128xf32>
    %14 = arith.select %11, %12, %13 : vector<128x128xi1>, vector<128x128xf32>
    %cst_4 = arith.constant 1.000000e+00 : f32
    %15 = vector.broadcast %cst_4 : f32 to vector<128x128xf32>
    %16 = arith.select %9, %15, %14 : vector<128x128xi1>, vector<128x128xf32>
    %c0_5 = arith.constant 0 : index
    %c0_6 = arith.constant 0 : index
    %17 = vector.load %arg3[%c0_5, %c0_6] : memref<128x1xf32, #tpu.memory_space<vmem>>, vector<128x1xf32>
    %18 = vector.broadcast %17 : vector<128x1xf32> to vector<128x128xf32>
    %19 = arith.mulf %16, %18 : vector<128x128xf32>
    %c0_7 = arith.constant 0 : index
    %c0_8 = arith.constant 0 : index
    %20 = vector.load %arg4[%c0_7, %c0_8] : memref<1x128xf32, #tpu.memory_space<vmem>>, vector<1x128xf32>
    %21 = vector.broadcast %20 : vector<1x128xf32> to vector<128x128xf32>
    %22 = arith.mulf %19, %21 : vector<128x128xf32>
    %23 = arith.truncf %22 : vector<128x128xf32> to vector<128x128xbf16>
    %c0_9 = arith.constant 0 : index
    %c0_10 = arith.constant 0 : index
    %24 = vector.load %arg5[%c0_9, %c0_10] : memref<128x128xbf16, #tpu.memory_space<vmem>>, vector<128x128xbf16>
    tpu.vector_store %arg5[%c0_9, %c0_10], %23 {strides = array<i32>} : memref<128x128xbf16, #tpu.memory_space<vmem>>, vector<128x128xbf16>,
    return
  }
  func.func @transform_0(%arg0: i32, %arg1: i32) -> (i32, i32) {
    %c0_i32 = arith.constant 0 : i32
    return %arg0, %arg1 : i32, i32
  }
  func.func @transform_1(%arg0: i32, %arg1: i32) -> (i32, i32) {
    %c0_i32 = arith.constant 0 : i32
    %c0_i32_0 = arith.constant 0 : i32
    return %arg0, %c0_i32 : i32, i32
  }
  func.func @transform_2(%arg0: i32, %arg1: i32) -> (i32, i32) {
    %c0_i32 = arith.constant 0 : i32
    %c0_i32_0 = arith.constant 0 : i32
    return %c0_i32, %arg1 : i32, i32
  }
  func.func @transform_3(%arg0: i32, %arg1: i32) -> (i32, i32) {
    %c0_i32 = arith.constant 0 : i32
    return %arg0, %arg1 : i32, i32
  }
}

</mosaic_0001>

<bundles_post_ra>
// kernel: tpu_custom_call.1
= control target key start
LH: loop header
LB: loop body
LE: loop exit
PB: predicated region body
PF: predicated region fallthrough
CT: control target
= control target key end

     0   :  { %v399_v3 = vmov 0   ;;  %s598_s0 = inlined_call_operand.vmem [shape: f32[128,128], index: 0, kind: input, shape index: {}]   ;;  %s599_s1 = inlined_call_operand.vmem [shape: f32[128,1], index: 1, kind: input, shape index: {}]   ;;  %s600_s2 = inlined_call_operand.vmem [shape: f32[1,128], index: 2, kind: input, shape index: {}]   ;;  %s601_s3 = inlined_call_operand.hbm [shape: bf16[128,128], index: 3, kind: output, shape index: {}]  }
   0x1   :  { %v139_v0 = vld [vmem:[%s599_s1 + $0x20] sm:$0xff]  ;;  %v137_v1 = vld [vmem:[%s599_s1 + $0x10] sm:$0xff]  ;;  %371 = vset.pattern.permute.xlu2 %v399_v3  ;;  %370 = vset.pattern.permute.xlu1 %v399_v3 }
   0x2   :  { %v135_v2 = vld [vmem:[%s599_s1] sm:$0xff]  ;;  %369 = vset.pattern.permute.xlu0 %v399_v3  ;;  %173 = vperm.xlu2 %371, %v139_v0  }
   0x3   :  { %163 = vperm.xlu1 %370, %v137_v1   ;;  %153 = vperm.xlu0 %369, %v135_v2  }
   0x4   :  { %8 = vsyncpa [#allocation3], 0  ;;  %v140_v4 = vld [vmem:[%s599_s1 + $0x28] sm:$0xff]  ;;  %v138_v5 = vld [vmem:[%s599_s1 + $0x18] sm:$0xff]  ;;  %v16_v17 = vlaneseq  ;;  %v400_v23 = vmov 0.0   ;;  %s305_s24 = sshll.u32 %s601_s3, 4  ;;  %s306_s24 = int_to_ptr.hbm [resolvable:$true] %s305_s24 }
   0x5   :  { %v136_v6 = vld [vmem:[%s599_s1 + $0x8] sm:$0xff]  ;;  %v143_v7 = vld [vmem:[%s599_s1 + $0x40] sm:$0xff]  ;;  %v142_v8 = vld [vmem:[%s599_s1 + $0x38] sm:$0xff]  ;;  %s402_s25 = smov 64  }
   0x6   :  { %v141_v9 = vld [vmem:[%s599_s1 + $0x30] sm:$0xff]  ;;  %v146_v10 = vld [vmem:[%s599_s1 + $0x58] sm:$0xff]  ;;  %v144_v12 = vld [vmem:[%s599_s1 + $0x48] sm:$0xff]  ;;  %v472_v18 = vshrl.u32 %v16_v17, 7  ;;  %v478_v21 = vand.u32 127, %v16_v17 }
   0x7   :  { %v145_v11 = vld [vmem:[%s599_s1 + $0x50] sm:$0xff]  ;;  %v148_v14 = vld [vmem:[%s599_s1 + $0x68] sm:$0xff]  ;;  %v147_v15 = vld [vmem:[%s599_s1 + $0x60] sm:$0xff] }
   0x8   :  { %v149_v13 = vld [vmem:[%s599_s1 + $0x70] sm:$0xff]  ;;  %v150_v16 = vld [vmem:[%s599_s1 + $0x78] sm:$0xff]  ;;  %v59_v19 = vld [vmem:[%s598_s0 + $0x20] sm:$0xff]  ;;  %v21_v20 = vadd.s32 32, %v472_v18  ;;  %v22_v25 = vadd.s32 40, %v472_v18  ;;  %v19_v38 = vadd.s32 16, %v472_v18  ;;  %vm71_vm9 = vcmp.eq.s32.totalorder %v472_v18, %v478_v21 }
   0x9   :  { %vm91_vm0 = vcmp.ne.f32.partialorder %v59_v19, 0.0  ;;  %v60_v22 = vld [vmem:[%s598_s0 + $0x28] sm:$0xff]  ;;  %v491_v31 = vld [vmem:[%s600_s2] ss:$0 sm:$0xff]  ;;  %v57_v37 = vld [vmem:[%s598_s0 + $0x10] sm:$0xff]  ;;  %v20_v43 = vadd.s32 24, %v472_v18 }
   0xa   :  { %178 = vperm.xlu2 %371, %v140_v4   ;;  %vm75_vm1 = vcmp.eq.s32.totalorder %v21_v20, %v478_v21  ;;  %v107_v24 = vsel %vm91_vm0, 1.0, %v400_v23  ;;  %vm92_vm2 = vcmp.ne.f32.partialorder %v60_v22, 0.0  ;;  %vm76_vm3 = vcmp.eq.s32.totalorder %v22_v25, %v478_v21  ;;  %v55_v39 = vld [vmem:[%s598_s0] sm:$0xff]  ;;  %v58_v40 = vld [vmem:[%s598_s0 + $0x18] sm:$0xff]  ;;  %v56_v41 = vld [vmem:[%s598_s0 + $0x8] sm:$0xff]  ;;  %s403_s2 = smov 4  }
   0xb   :  { %168 = vperm.xlu1 %370, %v138_v5   ;;  %158 = vperm.xlu0 %369, %v136_v6   ;;  %v123_v27 = vsel %vm75_vm1, 1.0, %v107_v24  ;;  %v108_v28 = vsel %vm92_vm2, 1.0, %v400_v23  ;;  %vm89_vm4 = vcmp.ne.f32.partialorder %v57_v37, 0.0  ;;  %vm87_vm5 = vcmp.ne.f32.partialorder %v55_v39, 0.0  ;;  %v62_v52 = vld [vmem:[%s598_s0 + $0x38] sm:$0xff]  ;;  %v61_v54 = vld [vmem:[%s598_s0 + $0x30] sm:$0xff] }
   0xc   :  { %v124_v30 = vsel %vm76_vm3, 1.0, %v108_v28  ;;  %vm73_vm6 = vcmp.eq.s32.totalorder %v19_v38, %v478_v21  ;;  %v105_v42 = vsel %vm89_vm4, 1.0, %v400_v23  ;;  %v18_v44 = vadd.s32 8, %v472_v18  ;;  %v63_v62 = vld [vmem:[%s598_s0 + $0x40] sm:$0xff]  ;;  %v66_v4 = vld [vmem:[%s598_s0 + $0x58] sm:$0xff] }
   0xd   :  { %vm90_vm7 = vcmp.ne.f32.partialorder %v58_v40, 0.0  ;;  %vm88_vm8 = vcmp.ne.f32.partialorder %v56_v41, 0.0  ;;  %v103_v47 = vsel %vm87_vm5, 1.0, %v400_v23  ;;  %v121_v48 = vsel %vm73_vm6, 1.0, %v105_v42  ;;  %v67_v38 = vld [vmem:[%s598_s0 + $0x60] sm:$0xff] }
   0xe   :  { %vm74_vm10 = vcmp.eq.s32.totalorder %v20_v43, %v478_v21  ;;  %v106_v49 = vsel %vm90_vm7, 1.0, %v400_v23  ;;  %vm72_vm11 = vcmp.eq.s32.totalorder %v18_v44, %v478_v21  ;;  %v104_v50 = vsel %vm88_vm8, 1.0, %v400_v23 }
   0xf   :  { %v119_v51 = vsel %vm71_vm9, 1.0, %v103_v47  ;;  %v122_v55 = vsel %vm74_vm10, 1.0, %v106_v49  ;;  %v120_v56 = vsel %vm72_vm11, 1.0, %v104_v50  ;;  %v24_v57 = vadd.s32 56, %v472_v18 }
  0x10   :  { %v23_v58 = vadd.s32 48, %v472_v18  ;;  %vm94_vm12 = vcmp.ne.f32.partialorder %v62_v52, 0.0  ;;  %vm93_vm13 = vcmp.ne.f32.partialorder %v61_v54, 0.0  ;;  %v25_v2 = vadd.s32 64, %v472_v18  ;;  %v69_v52 = vld [vmem:[%s598_s0 + $0x70] sm:$0xff] }
  0x11   :  { %vm78_vm14 = vcmp.eq.s32.totalorder %v24_v57, %v478_v21  ;;  %v110_v3 = vsel %vm94_vm12, 1.0, %v400_v23  ;;  %vm95_vm0 = vcmp.ne.f32.partialorder %v63_v62, 0.0  ;;  %vm98_vm1 = vcmp.ne.f32.partialorder %v66_v4, 0.0 }
  0x12   :  { %193 = vperm.xlu2 %371, %v143_v7   ;;  %vm77_vm15 = vcmp.eq.s32.totalorder %v23_v58, %v478_v21  ;;  %v27_v17 = vadd.s32 80, %v472_v18  ;;  %vm79_vm2 = vcmp.eq.s32.totalorder %v25_v2, %v478_v21  ;;  %v111_v19 = vsel %vm95_vm0, 1.0, %v400_v23 }
  0x13   :  { %188 = vperm.xlu1 %370, %v142_v8   ;;  %183 = vperm.xlu0 %369, %v141_v9   ;;  %v109_v8 = vsel %vm93_vm13, 1.0, %v400_v23  ;;  %v26_v20 = vadd.s32 72, %v472_v18  ;;  %v114_v25 = vsel %vm98_vm1, 1.0, %v400_v23  ;;  %v127_v28 = vsel %vm79_vm2, 1.0, %v111_v19 }
  0x14   :  { %vm81_vm6 = vcmp.eq.s32.totalorder %v27_v17, %v478_v21  ;;  %v30_v42 = vadd.s32 104, %v472_v18  ;;  %v29_v43 = vadd.s32 96, %v472_v18  ;;  %vm99_vm9 = vcmp.ne.f32.partialorder %v67_v38, 0.0 }
  0x15   :  { %vm80_vm7 = vcmp.eq.s32.totalorder %v26_v20, %v478_v21  ;;  %vm101_vm12 = vcmp.ne.f32.partialorder %v69_v52, 0.0  ;;  %v32_v62 = vadd.s32 120, %v472_v18 }
  0x16   :  { %vm84_vm10 = vcmp.eq.s32.totalorder %v30_v42, %v478_v21  ;;  %vm83_vm11 = vcmp.eq.s32.totalorder %v29_v43, %v478_v21 }
  0x1a   :  { %208 = vperm.xlu2 %371, %v146_v10   ;;  %v65_v10 = vld [vmem:[%s598_s0 + $0x50] sm:$0xff] }
  0x1b   :  { %203 = vperm.xlu1 %370, %v145_v11   ;;  %198 = vperm.xlu0 %369, %v144_v12   ;;  %v28_v11 = vadd.s32 88, %v472_v18  ;;  %vm97_vm3 = vcmp.ne.f32.partialorder %v65_v10, 0.0 }
  0x1d   :  { %vm82_vm5 = vcmp.eq.s32.totalorder %v28_v11, %v478_v21 }
  0x22   :  { %223 = vperm.xlu2 %371, %v149_v13  }
  0x23   :  { %218 = vperm.xlu1 %370, %v148_v14   ;;  %213 = vperm.xlu0 %369, %v147_v15   ;;  %v64_v14 = vld [vmem:[%s598_s0 + $0x48] sm:$0xff]  ;;  %v126_v15 = vsel %vm78_vm14, 1.0, %v110_v3 }
  0x24   :  { %vm96_vm4 = vcmp.ne.f32.partialorder %v64_v14, 0.0 }
  0x2b   :  { %228 = vperm.xlu0 %369, %v150_v16   ;;  %v125_v16 = vsel %vm77_vm15, 1.0, %v109_v8  ;;  %vm86_vm15 = vcmp.eq.s32.totalorder %v32_v62, %v478_v21 }
  0x5c   :  { %v174_v26 = vpop.permute.xlu2 %173 }
  0x5d   :  { %v235_v29 = vmul.f32 %v174_v26, %v123_v27 }
  0x5f   :  { %v255_v33 = vmul.f32 %v491_v31, %v235_v29  ;;  %v113_v29 = vsel %vm97_vm3, 1.0, %v400_v23 }
  0x60   :  { %v129_v40 = vsel %vm81_vm6, 1.0, %v113_v29 }
  0x64   :  { %v179_v32 = vpop.permute.xlu2 %178 }
  0x65   :  { %v236_v34 = vmul.f32 %v179_v32, %v124_v30 }
  0x67   :  { %v256_v35 = vmul.f32 %v491_v31, %v236_v34  ;;  %v130_v34 = vsel %vm82_vm5, 1.0, %v114_v25 }
  0x69   :  { %v330_v36 = vpack.c.bf16 %v256_v35, %v255_v33  ;;  %v112_v33 = vsel %vm96_vm4, 1.0, %v400_v23  ;;  %v68_v35 = vld [vmem:[%s598_s0 + $0x68] sm:$0xff] }
  0x6a   :  { %v128_v41 = vsel %vm80_vm7, 1.0, %v112_v33  ;;  %vm100_vm8 = vcmp.ne.f32.partialorder %v68_v35, 0.0 }
  0x6b   :  { %358 = vst [vmem:[#allocation2 + $0x10] sm:$0xff] %v330_v36   ;;  %v116_v50 = vsel %vm100_vm8, 1.0, %v400_v23 }
  0x6c   :  { %v194_v9 = vpop.permute.xlu2 %193 }
  0x6d   :  { %v239_v36 = vmul.f32 %v194_v9, %v127_v28 }
  0x6f   :  { %v259_v49 = vmul.f32 %v491_v31, %v239_v36 }
  0x74   :  { %v209_v39 = vpop.permute.xlu2 %208 }
  0x75   :  { %v164_v45 = vpop.permute.xlu1 %163  ;;  %v154_v46 = vpop.permute.xlu0 %153  ;;  %v242_v44 = vmul.f32 %v209_v39, %v130_v34 }
  0x76   :  { %v233_v53 = vmul.f32 %v164_v45, %v121_v48  ;;  %v231_v59 = vmul.f32 %v154_v46, %v119_v51 }
  0x77   :  { %v262_v51 = vmul.f32 %v491_v31, %v242_v44 }
  0x78   :  { %v253_v63 = vmul.f32 %v491_v31, %v233_v53  ;;  %v251_v5 = vmul.f32 %v491_v31, %v231_v59  ;;  %v70_v59 = vld [vmem:[%s598_s0 + $0x78] sm:$0xff]  ;;  %s401_s0 = smov [#allocation2]  }
  0x79   :  { %vm102_vm13 = vcmp.ne.f32.partialorder %v70_v59, 0.0  ;;  %s303_s21 = sshll.u32 %s401_s0, 4  ;;  %s304_s21 = int_to_ptr.vmem [resolvable:$true] %s303_s21 }
  0x7d   :  { %v169_v60 = vpop.permute.xlu1 %168  ;;  %v159_v61 = vpop.permute.xlu0 %158 }
  0x7e   :  { %v234_v0 = vmul.f32 %v169_v60, %v122_v55  ;;  %v232_v1 = vmul.f32 %v159_v61, %v120_v56  ;;  %v115_v55 = vsel %vm99_vm9, 1.0, %v400_v23  ;;  %v31_v56 = vadd.s32 112, %v472_v18 }
  0x7f   :  { %v132_v60 = vsel %vm84_vm10, 1.0, %v116_v50  ;;  %v131_v61 = vsel %vm83_vm11, 1.0, %v115_v55 }
  0x80   :  { %v254_v6 = vmul.f32 %v491_v31, %v234_v0  ;;  %v252_v7 = vmul.f32 %v491_v31, %v232_v1  ;;  %vm85_vm14 = vcmp.eq.s32.totalorder %v31_v56, %v478_v21  ;;  %v117_v1 = vsel %vm101_vm12, 1.0, %v400_v23 }
  0x81   :  { %v133_v18 = vsel %vm85_vm14, 1.0, %v117_v1 }
  0x82   :  { %v325_v12 = vpack.c.bf16 %v254_v6, %v253_v63  ;;  %v320_v13 = vpack.c.bf16 %v252_v7, %v251_v5  ;;  %v118_v6 = vsel %vm102_vm13, 1.0, %v400_v23  ;;  %v224_v7 = vpop.permute.xlu2 %223 }
  0x83   :  { %v134_v9 = vsel %vm86_vm15, 1.0, %v118_v6  ;;  %v245_v10 = vmul.f32 %v224_v7, %v133_v18 }
  0x84   :  { %357 = vst [vmem:[#allocation2 + $0x8] sm:$0xff] %v325_v12  }
  0x85   :  { %321 = vst [vmem:[#allocation2] sm:$0xff] %v320_v13   ;;  %v189_v22 = vpop.permute.xlu1 %188  ;;  %v184_v24 = vpop.permute.xlu0 %183  ;;  %v265_v13 = vmul.f32 %v491_v31, %v245_v10 }
  0x86   :  { %v238_v26 = vmul.f32 %v189_v22, %v126_v15  ;;  %v237_v27 = vmul.f32 %v184_v24, %v125_v16 }
  0x88   :  { %v258_v30 = vmul.f32 %v491_v31, %v238_v26  ;;  %v257_v32 = vmul.f32 %v491_v31, %v237_v27 }
  0x8a   :  { %v335_v37 = vpack.c.bf16 %v258_v30, %v257_v32 }
  0x8c   :  { %359 = vst [vmem:[#allocation2 + $0x18] sm:$0xff] %v335_v37  }
  0x8d   :  { %v204_v45 = vpop.permute.xlu1 %203  ;;  %v199_v46 = vpop.permute.xlu0 %198 }
  0x8e   :  { %v241_v47 = vmul.f32 %v204_v45, %v129_v40  ;;  %v240_v48 = vmul.f32 %v199_v46, %v128_v41 }
  0x90   :  { %v261_v53 = vmul.f32 %v491_v31, %v241_v47  ;;  %v260_v54 = vmul.f32 %v491_v31, %v240_v48 }
  0x92   :  { %v345_v57 = vpack.c.bf16 %v262_v51, %v261_v53  ;;  %v340_v58 = vpack.c.bf16 %v260_v54, %v259_v49 }
  0x94   :  { %361 = vst [vmem:[#allocation2 + $0x28] sm:$0xff] %v345_v57  }
  0x95   :  { %360 = vst [vmem:[#allocation2 + $0x20] sm:$0xff] %v340_v58   ;;  %v219_v63 = vpop.permute.xlu1 %218  ;;  %v214_v0 = vpop.permute.xlu0 %213 }
  0x96   :  { %v244_v2 = vmul.f32 %v219_v63, %v132_v60  ;;  %v243_v3 = vmul.f32 %v214_v0, %v131_v61 }
  0x98   :  { %v264_v4 = vmul.f32 %v491_v31, %v244_v2  ;;  %v263_v5 = vmul.f32 %v491_v31, %v243_v3 }
  0x9a   :  { %v350_v8 = vpack.c.bf16 %v264_v4, %v263_v5 }
  0x9c   :  { %362 = vst [vmem:[#allocation2 + $0x30] sm:$0xff] %v350_v8  }
  0x9d   :  { %v229_v11 = vpop.permute.xlu0 %228 }
  0x9e   :  { %v246_v12 = vmul.f32 %v229_v11, %v134_v9 }
  0xa0   :  { %v266_v21 = vmul.f32 %v491_v31, %v246_v12 }
  0xa2   :  { %v355_v23 = vpack.c.bf16 %v266_v21, %v265_v13 }
  0xa4   :  { %363 = vst [vmem:[#allocation2 + $0x38] sm:$0xff] %v355_v23  }
  0xa5   :  { %311 = dma.vmem_to_hbm [thread:$0]  %s304_s21, 1024, %s306_s24, [#allocation3], %s402_s25, %s402_s25, %s403_s2  }
  0xa6   :  { %397 = dma.done.wait [#allocation3], 1024  }
  0xa7   :  { %398 = vsyncadd [#allocation3], 4294966272 }
  0xa8   :  { %316 = vsyncpa [#allocation3], 1 }

</bundles_post_ra>
